<compile_context>
chip_gen: v7x
topology: tpu7x:2x2x1
jax: 0.10.0
libtpu: 0.0.40
codegen_flags: <defaults>
</compile_context>

<pallas_src>
import functools

import jax
import jax.numpy as jnp
from jax import lax
from jax.experimental import pallas as pl
from jax.experimental.pallas import tpu as pltpu

EPS = 1e-5


def _vmem_budget_bytes():
    """~85% of this generation's physical VMEM (v5e/v6e: 128 MiB, v7x: 64 MiB).

    Falls back to the smallest (v7x-safe) budget if the query is unavailable.
    """
    cap = None
    try:
        cap = getattr(pltpu.get_tpu_info(), "vmem_capacity_bytes", None)
    except Exception:  # not on TPU / query unavailable
        cap = None
    if not cap:
        cap = 64 << 20
    return int(cap * 0.85)


def _bn_affine(y, gamma, beta):
    """Training-mode BatchNorm1d on (N, C) f32 `y`, fused affine.

    gamma, beta: (1, C) f32. Two-pass (centered) variance is kept for
    numerical robustness; the affine uses `centered`, so beyond the final
    centered*scale+beta only one extra full-(N, C) VPU traversal remains.
    """
    inv_n = 1.0 / y.shape[0]
    mean = jnp.sum(y, axis=0, keepdims=True) * inv_n               # (1, C)
    centered = y - mean
    var = jnp.sum(centered * centered, axis=0, keepdims=True) * inv_n
    scale = gamma * lax.rsqrt(var + EPS)                           # (1, C)
    return centered * scale + beta                                 # (N, C)


def _fused_kernel(x_ref, w_ref, gb_ref, o_ref, *, num_layers):
    """grid=(1,): everything resident, layer loop fully unrolled in-kernel.

    x_ref  : (N, C)            f32  original input (residual source)
    w_ref  : (L, C_in, C_out)  bf16 pre-transposed Linear weights
    gb_ref : (L, 2, C)         f32  [gamma; beta]
    o_ref  : (N, C)            f32
    """
    x0 = x_ref[...].astype(jnp.float32)
    act = x0
    # Static trip count -> fully unrolled: the LLO scheduler sees all layers.
    for l in range(num_layers):
        # Linear (no bias): act @ W.T == act @ w_t[l]; bf16 MXU, f32 accumulate.
        y = jnp.dot(act.astype(jnp.bfloat16), w_ref[l],
                    preferred_element_type=jnp.float32)            # (N, C)
        gb = gb_ref[l]                                             # (2, C)
        act = _bn_affine(y, gb[0:1, :], gb[1:2, :])
    o_ref[...] = (act + x0).astype(o_ref.dtype)


def _stream_kernel(x_ref, w_ref, gb_ref, o_ref):
    """grid=(L,): one layer per step; weight tile double-buffered by Pallas.

    x_ref  : (N, C)       f32  resident original input (residual source)
    w_ref  : (1, C, C)    bf16 this layer's pre-transposed weight (C_in, C_out)
    gb_ref : (L, 2, C)    f32  resident gamma/beta for all layers
    o_ref  : (N, C)       f32  resident output block, doubling as the f32
                               activation carried across grid steps.
    """
    layer = pl.program_id(0)
    n_layers = pl.num_programs(0)

    @pl.when(layer == 0)
    def _():
        o_ref[...] = x_ref[...].astype(jnp.float32)

    act = o_ref[...]                                               # (N, C) f32
    y = jnp.dot(act.astype(jnp.bfloat16), w_ref[0],
                preferred_element_type=jnp.float32)                # (N, C)
    gb = gb_ref[layer]                                             # (2, C)
    out = _bn_affine(y, gb[0:1, :], gb[1:2, :])
    o_ref[...] = out

    @pl.when(layer == n_layers - 1)
    def _():
        o_ref[...] = out + x_ref[...].astype(jnp.float32)


def prepare_params(weights, gammas, betas):
    """One-time parameter prep (the analogue of module-init time).

    * weights (L, C_out, C_in) in PyTorch nn.Linear layout are pre-transposed
      to (L, C_in, C_out) and cast to bf16 ONCE, so the kernel streams each
      weight from HBM exactly once at half the bytes and contracts
      ((1,),(0,)) with no per-layer XLU transpose.
    * gamma/beta are stacked into a single (L, 2, C) f32 array that stays
      resident in VMEM for the whole kernel.
    """
    w_t = jnp.transpose(weights, (0, 2, 1)).astype(jnp.bfloat16)
    gb = jnp.stack([gammas, betas], axis=1).astype(jnp.float32)
    return w_t, gb


@functools.partial(jax.jit, static_argnames=("path",))
def mlp_residual_block(x, w_t, gb, path=None):
    """Forward pass of MLPResidualBlock.

    x   : (N, C) float input.
    w_t : (L, C_in, C_out) bf16 pre-transposed Linear weights (see prepare_params).
    gb  : (L, 2, C) f32, gb[:, 0] = BN gamma, gb[:, 1] = BN beta.
    path: None (auto) | "fused" | "stream".
    """
    n, c = x.shape
    num_layers = w_t.shape[0]
    x = x.astype(jnp.float32)

    vmem_budget = _vmem_budget_bytes()

    w_itemsize = w_t.dtype.itemsize
    xo_bytes = 2 * n * c * 4                      # resident x + resident o/act (f32)
    gb_bytes = num_layers * 2 * c * 4             # resident gamma/beta
    fused_need = num_layers * c * c * w_itemsize + xo_bytes + gb_bytes
    stream_need = 2 * c * c * w_itemsize + xo_bytes + gb_bytes  # dbl-buffered weight

    if path is None:
        # All-resident single-step kernel when everything fits comfortably
        # (removes per-grid-step overhead); otherwise stream weights per layer.
        path = "fused" if 2 * fused_need <= vmem_budget // 4 else "stream"

    needed = fused_need if path == "fused" else stream_need
    if 2 * needed > vmem_budget:
        raise ValueError(
            f"VMEM budget exceeded ({2 * needed} > {vmem_budget} bytes); "
            "tile C_out on an extra grid axis for this size (see TODO).")

    vmem_limit = int(vmem_budget)

    if path == "fused":
        return pl.pallas_call(
            functools.partial(_fused_kernel, num_layers=num_layers),
            out_shape=jax.ShapeDtypeStruct((n, c), jnp.float32),
            grid_spec=pltpu.PrefetchScalarGridSpec(
                num_scalar_prefetch=0,
                grid=(1,),
                in_specs=[
                    pl.BlockSpec((n, c), lambda i: (0, 0)),                  # x
                    pl.BlockSpec((num_layers, c, c), lambda i: (0, 0, 0)),   # all weights
                    pl.BlockSpec((num_layers, 2, c), lambda i: (0, 0, 0)),   # gamma/beta
                ],
                out_specs=pl.BlockSpec((n, c), lambda i: (0, 0)),
            ),
            compiler_params=pltpu.CompilerParams(
                dimension_semantics=("arbitrary",),
                vmem_limit_bytes=vmem_limit,
            ),
        )(x, w_t, gb)

    # Streaming path: grid over layers, weight tile double-buffered by Pallas.
    return pl.pallas_call(
        _stream_kernel,
        out_shape=jax.ShapeDtypeStruct((n, c), jnp.float32),
        grid_spec=pltpu.PrefetchScalarGridSpec(
            num_scalar_prefetch=0,
            grid=(num_layers,),
            in_specs=[
                pl.BlockSpec((n, c), lambda l: (0, 0)),                      # x: resident
                pl.BlockSpec((1, c, c), lambda l: (l, 0, 0)),                # weight[l]
                pl.BlockSpec((num_layers, 2, c), lambda l: (0, 0, 0)),       # gamma/beta
            ],
            out_specs=pl.BlockSpec((n, c), lambda l: (0, 0)),                # o: resident
        ),
        compiler_params=pltpu.CompilerParams(
            dimension_semantics=("arbitrary",),
            vmem_limit_bytes=vmem_limit,
        ),
    )(x, w_t, gb)


def _reference_f32(x, weights, gammas, betas):
    """Pure-JAX f32 reference reproducing the PyTorch forward (training-mode BN)."""
    identity = x
    out = x
    for l in range(weights.shape[0]):
        y = out @ weights[l].T
        mean = jnp.mean(y, axis=0, keepdims=True)
        var = jnp.mean((y - mean) ** 2, axis=0, keepdims=True)
        out = (y - mean) / jnp.sqrt(var + EPS) * gammas[l] + betas[l]
    return out + identity


def _reference_matched(x, w_t, gb):
    """Pure-JAX reference using the kernel's exact numeric recipe
    (bf16 matmul operands, f32 accumulation / BN) — validates the Pallas code."""
    identity = x.astype(jnp.float32)
    out = identity
    for l in range(w_t.shape[0]):
        y = jnp.dot(out.astype(jnp.bfloat16), w_t[l],
                    preferred_element_type=jnp.float32)
        out = _bn_affine(y, gb[l, 0:1, :], gb[l, 1:2, :])
    return out + identity


if __name__ == "__main__":
    # Small shapes consistent with the module: (batch, in_channels).
    N, C = 8, 128
    NUM_LAYERS = 2

    key = jax.random.PRNGKey(0)
    kx, kw, kg, kb = jax.random.split(key, 4)

    x = jax.random.normal(kx, (N, C), dtype=jnp.float32)
    bound = 1.0 / jnp.sqrt(jnp.float32(C))
    weights = jax.random.uniform(kw, (NUM_LAYERS, C, C), jnp.float32, -bound, bound)
    gammas = 1.0 + 0.1 * jax.random.normal(kg, (NUM_LAYERS, C), dtype=jnp.float32)
    betas = 0.1 * jax.random.normal(kb, (NUM_LAYERS, C), dtype=jnp.float32)

    # One-time parameter prep (pre-transpose + bf16 cast + gamma/beta pack).
    w_t, gb = prepare_params(weights, gammas, betas)

    # Auto path (fused single grid step at this size).
    out = jax.block_until_ready(mlp_residual_block(x, w_t, gb))
    # Also exercise the streaming (grid=(L,)) path used for large C / L.
    out_stream = jax.block_until_ready(mlp_residual_block(x, w_t, gb, path="stream"))

    ref_matched = _reference_matched(x, w_t, gb)
    ref_f32 = _reference_f32(x, weights, gammas, betas)

    assert out.shape == (N, C)
    # Implementation check: kernel vs. the same numeric recipe in pure JAX.
    assert jnp.allclose(out, ref_matched, atol=1e-4, rtol=1e-4), (
        f"fused max abs err {jnp.max(jnp.abs(out - ref_matched))}")
    assert jnp.allclose(out_stream, ref_matched, atol=1e-4, rtol=1e-4), (
        f"stream max abs err {jnp.max(jnp.abs(out_stream - ref_matched))}")
    # Fidelity vs. the f32 PyTorch-convention reference: the error budget is
    # the bf16 quantization of the matmul operands (~1e-3 per layer).
    assert jnp.max(jnp.abs(out - ref_f32)) < 5e-2, (
        f"f32-reference max abs err {jnp.max(jnp.abs(out - ref_f32))}")
    print("KERNEL_OK")
</pallas_src>

<mosaic_0001>
module attributes {stable_mosaic.version = 11 : i64} {
  func.func @_fused_kernel(%arg0: i32, %arg1: memref<8x128xf32, #tpu.memory_space<vmem>>, %arg2: memref<2x128x128xbf16, #tpu.memory_space<vmem>>, %arg3: memref<2x2x128xf32, #tpu.memory_space<vmem>>, %arg4: memref<8x128xf32, #tpu.memory_space<vmem>>) attributes {dimension_semantics = [#tpu.dimension_semantics<arbitrary>], iteration_bounds = array<i64: 1>, scalar_prefetch = 0 : i64, scratch_operands = 0 : i64, tpu.core_type = #tpu.core_type<tc>, window_params = [{pipeline_mode = #tpu.pipeline_mode<synchronous>, transform_indices = @transform_0, window_bounds = array<i64: 8, 128>}, {pipeline_mode = #tpu.pipeline_mode<synchronous>, transform_indices = @transform_1, window_bounds = array<i64: 2, 128, 128>}, {pipeline_mode = #tpu.pipeline_mode<synchronous>, transform_indices = @transform_2, window_bounds = array<i64: 2, 2, 128>}, {pipeline_mode = #tpu.pipeline_mode<synchronous>, transform_indices = @transform_3, window_bounds = array<i64: 8, 128>}]} {
    %c0 = arith.constant 0 : index
    %c0_0 = arith.constant 0 : index
    %0 = vector.load %arg1[%c0, %c0_0] : memref<8x128xf32, #tpu.memory_space<vmem>>, vector<8x128xf32>
    %1 = arith.truncf %0 : vector<8x128xf32> to vector<8x128xbf16>
    %c0_1 = arith.constant 0 : index
    %c0_2 = arith.constant 0 : index
    %c0_3 = arith.constant 0 : index
    %2 = vector.load %arg2[%c0_1, %c0_2, %c0_3] : memref<2x128x128xbf16, #tpu.memory_space<vmem>>, vector<1x128x128xbf16>
    %3 = vector.shape_cast %2 : vector<1x128x128xbf16> to vector<128x128xbf16>
    %cst = arith.constant dense<0.000000e+00> : vector<8x128xf32>
    %4 = tpu.matmul %1, %3, %cst {dimension_numbers = #tpu.dot_dimension_numbers<[1], [0], [0], [1], [0, 0, 1, 1], [], []>} : vector<8x128xbf16>, vector<128x128xbf16>, vector<8x128xf32> -> vector<8x128xf32>
    %c0_4 = arith.constant 0 : index
    %c0_5 = arith.constant 0 : index
    %c0_6 = arith.constant 0 : index
    %5 = vector.load %arg3[%c0_4, %c0_5, %c0_6] : memref<2x2x128xf32, #tpu.memory_space<vmem>>, vector<1x2x128xf32>
    %6 = vector.shape_cast %5 : vector<1x2x128xf32> to vector<2x128xf32>
    %7 = vector.extract_strided_slice %6 {offsets = [0, 0], sizes = [1, 128], strides = [1, 1]} : vector<2x128xf32> to vector<1x128xf32>
    %8 = vector.extract_strided_slice %6 {offsets = [1, 0], sizes = [1, 128], strides = [1, 1]} : vector<2x128xf32> to vector<1x128xf32>
    %cst_7 = arith.constant dense<0.000000e+00> : vector<128xf32>
    %9 = vector.multi_reduction <add>, %4, %cst_7 [0] : vector<8x128xf32> to vector<128xf32>
    %10 = vector.shape_cast %9 : vector<128xf32> to vector<1x128xf32>
    %cst_8 = arith.constant 1.250000e-01 : f32
    %11 = vector.broadcast %cst_8 : f32 to vector<1x128xf32>
    %12 = arith.mulf %10, %11 : vector<1x128xf32>
    %13 = vector.broadcast %12 : vector<1x128xf32> to vector<8x128xf32>
    %14 = arith.subf %4, %13 : vector<8x128xf32>
    %15 = arith.mulf %14, %14 : vector<8x128xf32>
    %cst_9 = arith.constant dense<0.000000e+00> : vector<128xf32>
    %16 = vector.multi_reduction <add>, %15, %cst_9 [0] : vector<8x128xf32> to vector<128xf32>
    %17 = vector.shape_cast %16 : vector<128xf32> to vector<1x128xf32>
    %cst_10 = arith.constant 1.250000e-01 : f32
    %18 = vector.broadcast %cst_10 : f32 to vector<1x128xf32>
    %19 = arith.mulf %17, %18 : vector<1x128xf32>
    %cst_11 = arith.constant 9.99999974E-6 : f32
    %20 = vector.broadcast %cst_11 : f32 to vector<1x128xf32>
    %21 = arith.addf %19, %20 : vector<1x128xf32>
    %22 = math.rsqrt %21 : vector<1x128xf32>
    %23 = arith.mulf %7, %22 : vector<1x128xf32>
    %24 = vector.broadcast %23 : vector<1x128xf32> to vector<8x128xf32>
    %25 = arith.mulf %14, %24 : vector<8x128xf32>
    %26 = vector.broadcast %8 : vector<1x128xf32> to vector<8x128xf32>
    %27 = arith.addf %25, %26 : vector<8x128xf32>
    %28 = arith.truncf %27 : vector<8x128xf32> to vector<8x128xbf16>
    %c1 = arith.constant 1 : index
    %c0_12 = arith.constant 0 : index
    %c0_13 = arith.constant 0 : index
    %29 = vector.load %arg2[%c1, %c0_12, %c0_13] : memref<2x128x128xbf16, #tpu.memory_space<vmem>>, vector<1x128x128xbf16>
    %30 = vector.shape_cast %29 : vector<1x128x128xbf16> to vector<128x128xbf16>
    %cst_14 = arith.constant dense<0.000000e+00> : vector<8x128xf32>
    %31 = tpu.matmul %28, %30, %cst_14 {dimension_numbers = #tpu.dot_dimension_numbers<[1], [0], [0], [1], [0, 0, 1, 1], [], []>} : vector<8x128xbf16>, vector<128x128xbf16>, vector<8x128xf32> -> vector<8x128xf32>
    %c1_15 = arith.constant 1 : index
    %c0_16 = arith.constant 0 : index
    %c0_17 = arith.constant 0 : index
    %32 = vector.load %arg3[%c1_15, %c0_16, %c0_17] : memref<2x2x128xf32, #tpu.memory_space<vmem>>, vector<1x2x128xf32>
    %33 = vector.shape_cast %32 : vector<1x2x128xf32> to vector<2x128xf32>
    %34 = vector.extract_strided_slice %33 {offsets = [0, 0], sizes = [1, 128], strides = [1, 1]} : vector<2x128xf32> to vector<1x128xf32>
    %35 = vector.extract_strided_slice %33 {offsets = [1, 0], sizes = [1, 128], strides = [1, 1]} : vector<2x128xf32> to vector<1x128xf32>
    %cst_18 = arith.constant dense<0.000000e+00> : vector<128xf32>
    %36 = vector.multi_reduction <add>, %31, %cst_18 [0] : vector<8x128xf32> to vector<128xf32>
    %37 = vector.shape_cast %36 : vector<128xf32> to vector<1x128xf32>
    %cst_19 = arith.constant 1.250000e-01 : f32
    %38 = vector.broadcast %cst_19 : f32 to vector<1x128xf32>
    %39 = arith.mulf %37, %38 : vector<1x128xf32>
    %40 = vector.broadcast %39 : vector<1x128xf32> to vector<8x128xf32>
    %41 = arith.subf %31, %40 : vector<8x128xf32>
    %42 = arith.mulf %41, %41 : vector<8x128xf32>
    %cst_20 = arith.constant dense<0.000000e+00> : vector<128xf32>
    %43 = vector.multi_reduction <add>, %42, %cst_20 [0] : vector<8x128xf32> to vector<128xf32>
    %44 = vector.shape_cast %43 : vector<128xf32> to vector<1x128xf32>
    %cst_21 = arith.constant 1.250000e-01 : f32
    %45 = vector.broadcast %cst_21 : f32 to vector<1x128xf32>
    %46 = arith.mulf %44, %45 : vector<1x128xf32>
    %cst_22 = arith.constant 9.99999974E-6 : f32
    %47 = vector.broadcast %cst_22 : f32 to vector<1x128xf32>
    %48 = arith.addf %46, %47 : vector<1x128xf32>
    %49 = math.rsqrt %48 : vector<1x128xf32>
    %50 = arith.mulf %34, %49 : vector<1x128xf32>
    %51 = vector.broadcast %50 : vector<1x128xf32> to vector<8x128xf32>
    %52 = arith.mulf %41, %51 : vector<8x128xf32>
    %53 = vector.broadcast %35 : vector<1x128xf32> to vector<8x128xf32>
    %54 = arith.addf %52, %53 : vector<8x128xf32>
    %55 = arith.addf %54, %0 : vector<8x128xf32>
    %c0_23 = arith.constant 0 : index
    %c0_24 = arith.constant 0 : index
    %56 = vector.load %arg4[%c0_23, %c0_24] : memref<8x128xf32, #tpu.memory_space<vmem>>, vector<8x128xf32>
    tpu.vector_store %arg4[%c0_23, %c0_24], %55 {strides = array<i32>} : memref<8x128xf32, #tpu.memory_space<vmem>>, vector<8x128xf32>,
    return
  }
  func.func @transform_0(%arg0: i32) -> (i32, i32) {
    %c0_i32 = arith.constant 0 : i32
    %c0_i32_0 = arith.constant 0 : i32
    %c0_i32_1 = arith.constant 0 : i32
    return %c0_i32, %c0_i32_0 : i32, i32
  }
  func.func @transform_1(%arg0: i32) -> (i32, i32, i32) {
    %c0_i32 = arith.constant 0 : i32
    %c0_i32_0 = arith.constant 0 : i32
    %c0_i32_1 = arith.constant 0 : i32
    %c0_i32_2 = arith.constant 0 : i32
    return %c0_i32, %c0_i32_0, %c0_i32_1 : i32, i32, i32
  }
  func.func @transform_2(%arg0: i32) -> (i32, i32, i32) {
    %c0_i32 = arith.constant 0 : i32
    %c0_i32_0 = arith.constant 0 : i32
    %c0_i32_1 = arith.constant 0 : i32
    %c0_i32_2 = arith.constant 0 : i32
    return %c0_i32, %c0_i32_0, %c0_i32_1 : i32, i32, i32
  }
  func.func @transform_3(%arg0: i32) -> (i32, i32) {
    %c0_i32 = arith.constant 0 : i32
    %c0_i32_0 = arith.constant 0 : i32
    %c0_i32_1 = arith.constant 0 : i32
    return %c0_i32, %c0_i32_0 : i32, i32
  }
}

</mosaic_0001>

<bundles_post_ra>
// kernel: mlp_residual_block.1
= control target key start
LH: loop header
LB: loop body
LE: loop exit
PB: predicated region body
PF: predicated region fallthrough
CT: control target
= control target key end

     0   :  { %8 = vsyncpa [#allocation3], 0  ;;  %s588_s0 = inlined_call_operand.hbm [shape: f32[8,128], index: 0, kind: input, shape index: {}]   ;;  %s589_s1 = inlined_call_operand.hbm [shape: bf16[2,128,128], index: 1, kind: input, shape index: {}]   ;;  %s590_s2 = inlined_call_operand.vmem [shape: f32[2,2,128], index: 2, kind: input, shape index: {}]   ;;  %s591_s3 = inlined_call_operand.hbm [shape: f32[8,128], index: 3, kind: output, shape index: {}]  }
   0x1   :  { %9 = vsyncpa [#allocation6], 0 }
   0x2   :  { %10 = vsyncpa [#allocation4], 0  ;;  %s507_s12 = smov [#allocation2]   ;;  %s508_s14 = smov [#allocation5]  }
   0x3   :  { %s17_s13 = sshll.u32 %s507_s12, 4  ;;  %s26_s15 = sshll.u32 %s508_s14, 4  ;;  %s18_s13 = int_to_ptr.vmem [resolvable:$true] %s17_s13  ;;  %s534_s15 = int_to_ptr.vmem [resolvable:$true] %s26_s15 }
   0x4   :  { %s435_s18 = scalar_lea.hbm %s588_s0, 128 }
   0x5   :  { %p436_p0 = scmp.ne.s32.totalorder %s588_s0, %s435_s18  ;;  %p439_p1 = scmp.lt.u32.totalorder %s435_s18, %s588_s0 }
   0x7   :  { %p441_p2 = pnand %p439_p1, %p436_p0 }
   0x9   :  { %444 = shalt.err (!%p441_p2)
}
   0xa   :  { %s445_s23 = scalar_lea.vmem %s18_s13, 128  ;;  %p450_p4 = scmp.lt.s32.totalorder %s18_s13, %s18_s13 }
   0xb   :  { %p446_p3 = scmp.ne.s32.totalorder %s18_s13, %s445_s23  ;;  %p451_p5 = scmp.lt.s32.totalorder %s445_s23, %s445_s23 }
   0xd   :  { %p452_p6 = por %p451_p5, %p450_p4 }
   0xf   :  { %p453_p7 = pnand %p452_p6, %p446_p3 }
  0x11   :  { %456 = shalt.err (!%p453_p7)
}
  0x12   :  { %20 = dma.hbm_to_vmem [thread:$0]  %s588_s0, 128, %s18_s13, [#allocation3]  }
  0x13   :  { %s457_s28 = scalar_lea.hbm %s589_s1, 2048 }
  0x14   :  { %p458_p8 = scmp.ne.s32.totalorder %s589_s1, %s457_s28  ;;  %p461_p9 = scmp.lt.u32.totalorder %s457_s28, %s589_s1 }
  0x16   :  { %p463_p10 = pnand %p461_p9, %p458_p8 }
  0x18   :  { %466 = shalt.err (!%p463_p10)
}
  0x19   :  { %s467_s6 = scalar_lea.vmem %s534_s15, 2048  ;;  %p472_p12 = scmp.lt.s32.totalorder %s534_s15, %s534_s15 }
  0x1a   :  { %p468_p11 = scmp.ne.s32.totalorder %s534_s15, %s467_s6  ;;  %p473_p13 = scmp.lt.s32.totalorder %s467_s6, %s467_s6 }
  0x1c   :  { %p474_p0 = por %p473_p13, %p472_p12 }
  0x1e   :  { %p475_p1 = pnand %p474_p0, %p468_p11 }
  0x20   :  { %478 = shalt.err (!%p475_p1)
}
  0x21   :  { %s509_s0 = smov 64   ;;  %s510_s7 = smov 4  }
  0x22   :  { %32 = dma.hbm_to_vmem [thread:$0]  %s589_s1, 2048, %s534_s15, [#allocation6], %s509_s0, %s509_s0, %s510_s7  }
  0x23   :  { %501 = dma.done.wait [#allocation3], 128  }
  0x24   :  { %502 = vsyncadd [#allocation3], 4294967168 }
  0x25   :  { %503 = dma.done.wait [#allocation6], 2048  }
  0x26   :  { %504 = vsyncadd [#allocation6], 4294965248  ;;  %v511_v0 = vmov 0.0   ;;  %vm512_vm0 = vmmov 0   ;;  %v415_v1 = vld [vmem:[#allocation5] sm:$0xff]   ;;  %v416_v2 = vld [vmem:[#allocation5 + $0x8] sm:$0xff]   ;;  %v168_v40 = vlaneseq }
  0x27   :  { %368 = vmatprep.subr.bf16.mxu0 %v511_v0  ;;  %384 = vmatprep.mubr.msk.bf16.mxu0 %vm512_vm0, %v511_v0  ;;  %v417_v3 = vld [vmem:[#allocation5 + $0x10] sm:$0xff]   ;;  %v418_v4 = vld [vmem:[#allocation5 + $0x18] sm:$0xff]   ;;  %v419_v5 = vld [vmem:[#allocation5 + $0x20] sm:$0xff]   ;;  %s513_s13 = smov [#allocation7]  }
  0x28   :  { %388 = vmatprep.subr.bf16.mxu1 %v511_v0  ;;  %404 = vmatprep.mubr.msk.bf16.mxu1 %vm512_vm0, %v511_v0  ;;  %v420_v6 = vld [vmem:[#allocation5 + $0x28] sm:$0xff]   ;;  %v421_v7 = vld [vmem:[#allocation5 + $0x30] sm:$0xff]   ;;  %v422_v8 = vld [vmem:[#allocation5 + $0x38] sm:$0xff]   ;;  %v169_v41 = vshrl.u32 %v168_v40, 7  ;;  %s323_s14 = sshll.u32 %s513_s13, 4  ;;  %s324_s14 = int_to_ptr.vmem [resolvable:$true] %s323_s14 }
  0x29   :  { %369 = vmatpush3.bf16.msra.mxu0 %v415_v1  ;;  %v565_v9 = vld [vmem:[#allocation2] sm:$0xff]  ;;  %v423_v11 = vld [vmem:[#allocation5 + $0x40] sm:$0xff]   ;;  %v424_v12 = vld [vmem:[#allocation5 + $0x48] sm:$0xff]   ;;  %s479_s15 = scalar_lea.vmem %s324_s14, 128  ;;  %p484_p3 = scmp.lt.s32.totalorder %s324_s14, %s324_s14 }
  0x2a   :  { %370 = vmatprep.subr.bf16.mxu0 %v511_v0  ;;  %v43_v10 = vpack.c.bf16 %v565_v9, %v565_v9  ;;  %389 = vmatpush3.bf16.msra.mxu1 %v423_v11  ;;  %v425_v13 = vld [vmem:[#allocation5 + $0x50] sm:$0xff]   ;;  %v426_v14 = vld [vmem:[#allocation5 + $0x58] sm:$0xff]   ;;  %v427_v15 = vld [vmem:[#allocation5 + $0x60] sm:$0xff]   ;;  %v170_v43 = vsub.s32 0, %v169_v41  ;;  %v175_v44 = vsub.s32 1, %v169_v41  ;;  %p480_p2 = scmp.ne.s32.totalorder %s324_s14, %s479_s15  ;;  %p485_p4 = scmp.lt.s32.totalorder %s479_s15, %s479_s15 }
  0x2b   :  { %390 = vmatprep.subr.bf16.mxu1 %v511_v0  ;;  %v428_v16 = vld [vmem:[#allocation5 + $0x68] sm:$0xff]   ;;  %v429_v17 = vld [vmem:[#allocation5 + $0x70] sm:$0xff]   ;;  %v430_v18 = vld [vmem:[#allocation5 + $0x78] sm:$0xff]  }
  0x2c   :  { %v148_v42 = vld [vmem:[%s590_s2] sm:$0x3]  ;;  %p486_p5 = por %p485_p4, %p484_p3 }
  0x2d   :  { %371 = vmatpush3.bf16.msra.mxu0 %v416_v2  ;;  %v176_v48 = vrot.slane %v148_v42, %v175_v44 }
  0x2e   :  { %372 = vmatprep.subr.bf16.mxu0 %v511_v0  ;;  %391 = vmatpush3.bf16.msra.mxu1 %v424_v12  ;;  %p487_p6 = pnand %p486_p5, %p480_p2 }
  0x2f   :  { %392 = vmatprep.subr.bf16.mxu1 %v511_v0 }
  0x31   :  { %373 = vmatpush3.bf16.msra.mxu0 %v417_v3 }
  0x32   :  { %374 = vmatprep.subr.bf16.mxu0 %v511_v0  ;;  %393 = vmatpush3.bf16.msra.mxu1 %v425_v13 }
  0x33   :  { %394 = vmatprep.subr.bf16.mxu1 %v511_v0 }
  0x35   :  { %375 = vmatpush3.bf16.msra.mxu0 %v418_v4 }
  0x36   :  { %376 = vmatprep.subr.bf16.mxu0 %v511_v0  ;;  %395 = vmatpush3.bf16.msra.mxu1 %v426_v14 }
  0x37   :  { %396 = vmatprep.subr.bf16.mxu1 %v511_v0 }
  0x39   :  { %377 = vmatpush3.bf16.msra.mxu0 %v419_v5 }
  0x3a   :  { %378 = vmatprep.subr.bf16.mxu0 %v511_v0  ;;  %397 = vmatpush3.bf16.msra.mxu1 %v427_v15 }
  0x3b   :  { %398 = vmatprep.subr.bf16.mxu1 %v511_v0 }
  0x3d   :  { %379 = vmatpush3.bf16.msra.mxu0 %v420_v6 }
  0x3e   :  { %380 = vmatprep.subr.bf16.mxu0 %v511_v0  ;;  %399 = vmatpush3.bf16.msra.mxu1 %v428_v16 }
  0x3f   :  { %400 = vmatprep.subr.bf16.mxu1 %v511_v0 }
  0x41   :  { %381 = vmatpush3.bf16.msra.mxu0 %v421_v7 }
  0x42   :  { %382 = vmatprep.subr.bf16.mxu0 %v511_v0  ;;  %401 = vmatpush3.bf16.msra.mxu1 %v429_v17 }
  0x43   :  { %402 = vmatprep.subr.bf16.mxu1 %v511_v0 }
  0x45   :  { %383 = vmatpush3.bf16.msra.mxu0 %v422_v8 }
  0x46   :  { %403 = vmatpush3.bf16.msra.mxu1 %v430_v18 }
  0x48   :  { %385 = vmatmul.mubr.bf16.vlgmr.msra.gmra.mrb[0].mxu0 %v43_v10  ;;  %v349_v10 = vld [vmem:[%s590_s2 + $0x2] sm:$0x3] }
  0x49   :  { %v313_v14 = vrot.slane %v349_v10, %v175_v44 }
 0x11b   :  { %v142_v19 = vpop.f32.mrb[0].mxu0 }
 0x11c   :  { %v149_v20 = vrot.slane %v142_v19, 4  ;;  %v386_v21 = vpop.f32.mrb[1].mxu0 }
 0x11d   :  { %v145_v22 = vpop.f32.mrb[2].mxu0 }
 0x11e   :  { %v150_v23 = vadd.f32 %v149_v20, %v142_v19  ;;  %v387_v24 = vpop.f32.mrb[3].mxu0 }
 0x120   :  { %v151_v25 = vrot.slane %v150_v23, 2 }
 0x122   :  { %v152_v26 = vadd.f32 %v151_v25, %v150_v23 }
 0x124   :  { %v153_v27 = vrot.slane %v152_v26, 1 }
 0x126   :  { %v154_v28 = vadd.f32 %v153_v27, %v152_v26 }
 0x128   :  { %v155_v29 = vmul.f32 0.125, %v154_v28 }
 0x12a   :  { %v156_v30 = vsub.f32 %v142_v19, %v155_v29 }
 0x12c   :  { %v157_v31 = vmul.f32 %v156_v30, %v156_v30 }
 0x12e   :  { %v158_v32 = vrot.slane %v157_v31, 4 }
 0x130   :  { %v159_v33 = vadd.f32 %v158_v32, %v157_v31 }
 0x132   :  { %v160_v34 = vrot.slane %v159_v33, 2 }
 0x134   :  { %v161_v35 = vadd.f32 %v160_v34, %v159_v33 }
 0x136   :  { %v162_v36 = vrot.slane %v161_v35, 1 }
 0x138   :  { %v163_v37 = vadd.f32 %v162_v36, %v161_v35 }
 0x13a   :  { %v164_v38 = vmul.f32 0.125, %v163_v37 }
 0x13c   :  { %v165_v39 = vadd.f32 1e-05, %v164_v38 }
 0x13e   :  { %431 = vrsqrt.f32 %v165_v39 }
 0x148   :  { %v432_v45 = vpop.eup %431 }
 0x149   :  { %v167_v46 = vmul.f32 %v432_v45, %v148_v42 }
 0x14b   :  { %v171_v47 = vrot.slane %v167_v46, %v170_v43 }
 0x14d   :  { %v172_v49 = vmul.f32 %v171_v47, %v156_v30 }
 0x14f   :  { %v177_v50 = vadd.f32 %v176_v48, %v172_v49 }
 0x151   :  { %v178_v51 = vpack.c.bf16 %v177_v50, %v177_v50 }
 0x153   :  { %405 = vmatmul.mubr.bf16.vlgmr.msra.gmra.mrb[0].mxu1 %v178_v51 }
 0x226   :  { %v278_v52 = vpop.f32.mrb[0].mxu1 }
 0x227   :  { %v286_v53 = vrot.slane %v278_v52, 4  ;;  %v406_v54 = vpop.f32.mrb[1].mxu1 }
 0x228   :  { %v281_v55 = vpop.f32.mrb[2].mxu1 }
 0x229   :  { %v287_v56 = vadd.f32 %v286_v53, %v278_v52  ;;  %v407_v57 = vpop.f32.mrb[3].mxu1 }
 0x22b   :  { %v288_v58 = vrot.slane %v287_v56, 2 }
 0x22d   :  { %v289_v59 = vadd.f32 %v288_v58, %v287_v56 }
 0x22f   :  { %v290_v60 = vrot.slane %v289_v59, 1 }
 0x231   :  { %v291_v61 = vadd.f32 %v290_v60, %v289_v59 }
 0x233   :  { %v292_v62 = vmul.f32 0.125, %v291_v61 }
 0x235   :  { %v293_v63 = vsub.f32 %v278_v52, %v292_v62 }
 0x237   :  { %v294_v0 = vmul.f32 %v293_v63, %v293_v63 }
 0x239   :  { %v295_v1 = vrot.slane %v294_v0, 4 }
 0x23b   :  { %v296_v2 = vadd.f32 %v295_v1, %v294_v0 }
 0x23d   :  { %v297_v3 = vrot.slane %v296_v2, 2 }
 0x23f   :  { %v298_v4 = vadd.f32 %v297_v3, %v296_v2 }
 0x241   :  { %v299_v5 = vrot.slane %v298_v4, 1 }
 0x243   :  { %v300_v6 = vadd.f32 %v299_v5, %v298_v4 }
 0x245   :  { %v301_v7 = vmul.f32 0.125, %v300_v6 }
 0x247   :  { %v302_v8 = vadd.f32 1e-05, %v301_v7 }
 0x249   :  { %433 = vrsqrt.f32 %v302_v8 }
 0x253   :  { %v434_v11 = vpop.eup %433 }
 0x254   :  { %v304_v12 = vmul.f32 %v434_v11, %v349_v10 }
 0x256   :  { %v308_v13 = vrot.slane %v304_v12, %v170_v43 }
 0x258   :  { %v309_v15 = vmul.f32 %v308_v13, %v293_v63 }
 0x25a   :  { %v314_v16 = vadd.f32 %v313_v14, %v309_v15 }
 0x25c   :  { %v315_v17 = vadd.f32 %v314_v16, %v565_v9 }
 0x25e   :  { %316 = vst [vmem:[#allocation7] sm:$0xff] %v315_v17 }
 0x25f   :  { %490 = shalt.err (!%p487_p6)
}
 0x260   :  { %s491_s17 = scalar_lea.hbm %s591_s3, 128 }
 0x261   :  { %p492_p7 = scmp.ne.s32.totalorder %s591_s3, %s491_s17  ;;  %p495_p8 = scmp.lt.u32.totalorder %s491_s17, %s591_s3 }
 0x263   :  { %p497_p9 = pnand %p495_p8, %p492_p7 }
 0x265   :  { %500 = shalt.err (!%p497_p9)
}
 0x266   :  { %326 = dma.vmem_to_hbm [thread:$0]  %s324_s14, 128, %s591_s3, [#allocation4]  }
 0x267   :  { %505 = dma.done.wait [#allocation4], 128  }
 0x268   :  { %506 = vsyncadd [#allocation4], 4294967168 }
 0x269   :  { %330 = vsyncpa [#allocation3], 1 }
 0x26a   :  { %331 = vsyncpa [#allocation6], 1 }
 0x26b   :  { %332 = vsyncpa [#allocation4], 1 }

</bundles_post_ra>
